<compile_context>
chip_gen: v7x
topology: tpu7x:2x2x1
jax: 0.10.0
libtpu: 0.0.40
codegen_flags: <defaults>
</compile_context>

<pallas_src>
import functools

import jax
import jax.numpy as jnp
from jax.experimental import pallas as pl
from jax.experimental.pallas import tpu as pltpu


# ----------------------------- config ---------------------------------------
class Config:
    decoder_layer_sizes = [32, 32, 8]   # MLP hidden/output sizes
    latent_size = 16
    dim_condition = 16
    action_tanh = True


PAD = 128  # lane-padded feature width used inside the kernel


def _round_up(x: int, m: int) -> int:
    return (x + m - 1) // m * m


# ----------------------------- kernel ---------------------------------------
def _mlp_kernel(x_ref, w_ref, b_ref, out_ref, *, num_layers, in0, action_tanh):
    """Fused MLP over one batch tile.

    x_ref:   (TB, in0)          concatenated [z, c] rows
    w_ref:   (L, PAD, PAD)      zero-padded (in, out) weights, layer-major
    b_ref:   (L, 1, PAD)        zero-padded biases
    out_ref: (TB, PAD)          lane-padded output (cols >= real out_dim are 0)
    """
    # Layer 0: only the first `in0` rows of the padded W0 are meaningful.
    h = (
        jnp.dot(x_ref[...], w_ref[0, :in0, :], preferred_element_type=jnp.float32)
        + b_ref[0]
    )
    if num_layers > 1:
        h = jnp.maximum(h, 0.0)
    elif action_tanh:
        h = jnp.tanh(h)

    # Remaining layers. Zero-padded rows/cols contribute nothing, so the
    # padded columns of `h` stay exactly zero through ReLU/Tanh.
    for i in range(1, num_layers):
        h = jnp.dot(h, w_ref[i], preferred_element_type=jnp.float32) + b_ref[i]
        if i + 1 < num_layers:
            h = jnp.maximum(h, 0.0)
        elif action_tanh:
            h = jnp.tanh(h)

    out_ref[...] = h.astype(out_ref.dtype)


# ----------------------------- one-time param packing ------------------------
def pack_params(params):
    """Pack torch-layout (W:(out,in), b:(out,)) params into two padded slabs.

    Returns:
      w_slab: (L, PAD, PAD) fp32, layer i holds W_i.T in the top-left corner.
      b_slab: (L, 1, PAD)   fp32, layer i holds b_i in the leading lanes.
    Done ONCE at init time; the per-call wrapper does no weight reshaping.
    """
    num_layers = len(params)
    w_slab = jnp.zeros((num_layers, PAD, PAD), jnp.float32)
    b_slab = jnp.zeros((num_layers, 1, PAD), jnp.float32)
    for i, (w, b) in enumerate(params):
        out_d, in_d = w.shape
        assert in_d <= PAD and out_d <= PAD, "layer wider than PAD=128 lanes"
        w_slab = w_slab.at[i, :in_d, :out_d].set(jnp.transpose(w).astype(jnp.float32))
        b_slab = b_slab.at[i, 0, :out_d].set(b.astype(jnp.float32))
    return w_slab, b_slab


# ----------------------------- forward wrapper --------------------------------
def make_cvae_decoder(w_slab, b_slab, config: Config):
    """Returns a jitted forward(z, c) -> (B, out_dim) closure over packed params."""
    num_layers = w_slab.shape[0]
    in0 = config.latent_size + config.dim_condition
    out_dim = config.decoder_layer_sizes[-1]

    kernel = functools.partial(
        _mlp_kernel,
        num_layers=num_layers,
        in0=in0,
        action_tanh=config.action_tanh,
    )

    @jax.jit
    def forward(z, c):
        # Single concat done in the wrapper (32 features fit one lane tile).
        x = jnp.concatenate([z, c], axis=-1)           # (B, in0)
        batch = x.shape[0]

        # Batch tile: multiple of 8 sublanes, capped at 128 rows per grid step.
        tb = min(128, _round_up(batch, 8))
        padded_b = _round_up(batch, tb)
        if padded_b != batch:
            x = jnp.pad(x, ((0, padded_b - batch), (0, 0)))

        out_padded = pl.pallas_call(
            kernel,
            out_shape=jax.ShapeDtypeStruct((padded_b, PAD), jnp.float32),
            grid=(padded_b // tb,),
            in_specs=[
                pl.BlockSpec((tb, in0), lambda i: (i, 0)),          # x tile
                pl.BlockSpec(w_slab.shape, lambda i: (0, 0, 0)),    # weights resident
                pl.BlockSpec(b_slab.shape, lambda i: (0, 0, 0)),    # biases resident
            ],
            out_specs=pl.BlockSpec((tb, PAD), lambda i: (i, 0)),    # lane-dense store
            compiler_params=pltpu.CompilerParams(
                dimension_semantics=("parallel",),
            ),
        )(x, w_slab, b_slab)

        return out_padded[:batch, :out_dim]

    return forward


# ----------------------------- param init ------------------------------------
def init_params(key, config: Config):
    """Deterministic init matching torch.nn.Linear default (U(-k, k), k=1/sqrt(in))."""
    input_size = config.latent_size + config.dim_condition
    sizes = [input_size] + list(config.decoder_layer_sizes)
    params = []
    for in_size, out_size in zip(sizes[:-1], sizes[1:]):
        key, kw, kb = jax.random.split(key, 3)
        k = 1.0 / jnp.sqrt(jnp.float32(in_size))
        w = jax.random.uniform(kw, (out_size, in_size), jnp.float32, -k, k)
        b = jax.random.uniform(kb, (out_size,), jnp.float32, -k, k)
        params.append((w, b))
    return params


# pure-JAX reference (mirrors the PyTorch forward exactly)
def reference_forward(z, c, params, config: Config):
    x = jnp.concatenate([z, c], axis=-1)
    n = len(params)
    for i, (w, b) in enumerate(params):
        x = x @ w.T + b
        if i + 1 < n:
            x = jnp.maximum(x, 0.0)
        elif config.action_tanh:
            x = jnp.tanh(x)
    return x


# ----------------------------- main -------------------------------------------
if __name__ == "__main__":
    cfg = Config()
    key = jax.random.PRNGKey(0)
    key, kz, kc = jax.random.split(key, 3)

    B = 2
    z = jax.random.normal(kz, (B, cfg.latent_size), jnp.float32)
    c = jax.random.normal(kc, (B, cfg.dim_condition), jnp.float32)

    params = init_params(key, cfg)

    # One-time weight packing + decoder construction (hoisted out of the call).
    w_slab, b_slab = pack_params(params)
    decoder = make_cvae_decoder(w_slab, b_slab, cfg)

    out = jax.block_until_ready(decoder(z, c))

    ref = reference_forward(z, c, params, cfg)
    assert out.shape == (B, cfg.decoder_layer_sizes[-1])
    assert jnp.allclose(out, ref, atol=1e-5, rtol=1e-5), "mismatch vs reference"

    print("KERNEL_OK")
</pallas_src>

<mosaic_0001>
module attributes {stable_mosaic.version = 11 : i64} {
  func.func @_mlp_kernel(%arg0: i32, %arg1: memref<8x32xf32, #tpu.memory_space<vmem>>, %arg2: memref<3x128x128xf32, #tpu.memory_space<vmem>>, %arg3: memref<3x1x128xf32, #tpu.memory_space<vmem>>, %arg4: memref<8x128xf32, #tpu.memory_space<vmem>>) attributes {dimension_semantics = [#tpu.dimension_semantics<parallel>], iteration_bounds = array<i64: 1>, scalar_prefetch = 0 : i64, scratch_operands = 0 : i64, tpu.core_type = #tpu.core_type<tc>, window_params = [{transform_indices = @transform_0, window_bounds = array<i64: 8, 32>}, {pipeline_mode = #tpu.pipeline_mode<synchronous>, transform_indices = @transform_1, window_bounds = array<i64: 3, 128, 128>}, {pipeline_mode = #tpu.pipeline_mode<synchronous>, transform_indices = @transform_2, window_bounds = array<i64: 3, 1, 128>}, {transform_indices = @transform_3, window_bounds = array<i64: 8, 128>}]} {
    %c0 = arith.constant 0 : index
    %c0_0 = arith.constant 0 : index
    %0 = vector.load %arg1[%c0, %c0_0] : memref<8x32xf32, #tpu.memory_space<vmem>>, vector<8x32xf32>
    %c0_1 = arith.constant 0 : index
    %c0_2 = arith.constant 0 : index
    %c0_3 = arith.constant 0 : index
    %1 = vector.load %arg2[%c0_1, %c0_2, %c0_3] : memref<3x128x128xf32, #tpu.memory_space<vmem>>, vector<1x32x128xf32>
    %2 = vector.shape_cast %1 : vector<1x32x128xf32> to vector<32x128xf32>
    %cst = arith.constant dense<0.000000e+00> : vector<8x128xf32>
    %3 = tpu.matmul %0, %2, %cst {dimension_numbers = #tpu.dot_dimension_numbers<[1], [0], [0], [1], [0, 0, 1, 1], [], []>} : vector<8x32xf32>, vector<32x128xf32>, vector<8x128xf32> -> vector<8x128xf32>
    %c0_4 = arith.constant 0 : index
    %c0_5 = arith.constant 0 : index
    %c0_6 = arith.constant 0 : index
    %4 = vector.load %arg3[%c0_4, %c0_5, %c0_6] : memref<3x1x128xf32, #tpu.memory_space<vmem>>, vector<1x1x128xf32>
    %5 = vector.shape_cast %4 : vector<1x1x128xf32> to vector<1x128xf32>
    %6 = vector.broadcast %5 : vector<1x128xf32> to vector<8x128xf32>
    %7 = arith.addf %3, %6 : vector<8x128xf32>
    %cst_7 = arith.constant 0.000000e+00 : f32
    %8 = vector.broadcast %cst_7 : f32 to vector<8x128xf32>
    %9 = arith.maximumf %7, %8 : vector<8x128xf32>
    %c1 = arith.constant 1 : index
    %c0_8 = arith.constant 0 : index
    %c0_9 = arith.constant 0 : index
    %10 = vector.load %arg2[%c1, %c0_8, %c0_9] : memref<3x128x128xf32, #tpu.memory_space<vmem>>, vector<1x128x128xf32>
    %11 = vector.shape_cast %10 : vector<1x128x128xf32> to vector<128x128xf32>
    %cst_10 = arith.constant dense<0.000000e+00> : vector<8x128xf32>
    %12 = tpu.matmul %9, %11, %cst_10 {dimension_numbers = #tpu.dot_dimension_numbers<[1], [0], [0], [1], [0, 0, 1, 1], [], []>} : vector<8x128xf32>, vector<128x128xf32>, vector<8x128xf32> -> vector<8x128xf32>
    %c1_11 = arith.constant 1 : index
    %c0_12 = arith.constant 0 : index
    %c0_13 = arith.constant 0 : index
    %13 = vector.load %arg3[%c1_11, %c0_12, %c0_13] : memref<3x1x128xf32, #tpu.memory_space<vmem>>, vector<1x1x128xf32>
    %14 = vector.shape_cast %13 : vector<1x1x128xf32> to vector<1x128xf32>
    %15 = vector.broadcast %14 : vector<1x128xf32> to vector<8x128xf32>
    %16 = arith.addf %12, %15 : vector<8x128xf32>
    %cst_14 = arith.constant 0.000000e+00 : f32
    %17 = vector.broadcast %cst_14 : f32 to vector<8x128xf32>
    %18 = arith.maximumf %16, %17 : vector<8x128xf32>
    %c2 = arith.constant 2 : index
    %c0_15 = arith.constant 0 : index
    %c0_16 = arith.constant 0 : index
    %19 = vector.load %arg2[%c2, %c0_15, %c0_16] : memref<3x128x128xf32, #tpu.memory_space<vmem>>, vector<1x128x128xf32>
    %20 = vector.shape_cast %19 : vector<1x128x128xf32> to vector<128x128xf32>
    %cst_17 = arith.constant dense<0.000000e+00> : vector<8x128xf32>
    %21 = tpu.matmul %18, %20, %cst_17 {dimension_numbers = #tpu.dot_dimension_numbers<[1], [0], [0], [1], [0, 0, 1, 1], [], []>} : vector<8x128xf32>, vector<128x128xf32>, vector<8x128xf32> -> vector<8x128xf32>
    %c2_18 = arith.constant 2 : index
    %c0_19 = arith.constant 0 : index
    %c0_20 = arith.constant 0 : index
    %22 = vector.load %arg3[%c2_18, %c0_19, %c0_20] : memref<3x1x128xf32, #tpu.memory_space<vmem>>, vector<1x1x128xf32>
    %23 = vector.shape_cast %22 : vector<1x1x128xf32> to vector<1x128xf32>
    %24 = vector.broadcast %23 : vector<1x128xf32> to vector<8x128xf32>
    %25 = arith.addf %21, %24 : vector<8x128xf32>
    %26 = math.tanh %25 : vector<8x128xf32>
    %c0_21 = arith.constant 0 : index
    %c0_22 = arith.constant 0 : index
    %27 = vector.load %arg4[%c0_21, %c0_22] : memref<8x128xf32, #tpu.memory_space<vmem>>, vector<8x128xf32>
    tpu.vector_store %arg4[%c0_21, %c0_22], %26 {strides = array<i32>} : memref<8x128xf32, #tpu.memory_space<vmem>>, vector<8x128xf32>,
    return
  }
  func.func @transform_0(%arg0: i32) -> (i32, i32) {
    %c0_i32 = arith.constant 0 : i32
    %c0_i32_0 = arith.constant 0 : i32
    return %arg0, %c0_i32 : i32, i32
  }
  func.func @transform_1(%arg0: i32) -> (i32, i32, i32) {
    %c0_i32 = arith.constant 0 : i32
    %c0_i32_0 = arith.constant 0 : i32
    %c0_i32_1 = arith.constant 0 : i32
    %c0_i32_2 = arith.constant 0 : i32
    return %c0_i32, %c0_i32_0, %c0_i32_1 : i32, i32, i32
  }
  func.func @transform_2(%arg0: i32) -> (i32, i32, i32) {
    %c0_i32 = arith.constant 0 : i32
    %c0_i32_0 = arith.constant 0 : i32
    %c0_i32_1 = arith.constant 0 : i32
    %c0_i32_2 = arith.constant 0 : i32
    return %c0_i32, %c0_i32_0, %c0_i32_1 : i32, i32, i32
  }
  func.func @transform_3(%arg0: i32) -> (i32, i32) {
    %c0_i32 = arith.constant 0 : i32
    %c0_i32_0 = arith.constant 0 : i32
    return %arg0, %c0_i32 : i32, i32
  }
}

</mosaic_0001>

<bundles_post_ra>
// kernel: forward.1
= control target key start
LH: loop header
LB: loop body
LE: loop exit
PB: predicated region body
PF: predicated region fallthrough
CT: control target
= control target key end

     0   :  { %8 = vsyncpa [#allocation3], 0  ;;  %s525_s12 = smov [#allocation2]   ;;  %s599_s0 = inlined_call_operand.vmem [shape: f32[8,32], index: 0, kind: input, shape index: {}]   ;;  %s600_s1 = inlined_call_operand.hbm [shape: f32[3,128,128], index: 1, kind: input, shape index: {}]   ;;  %s601_s2 = inlined_call_operand.vmem [shape: f32[3,1,128], index: 2, kind: input, shape index: {}]   ;;  %s602_s3 = inlined_call_operand.vmem [shape: f32[8,128], index: 3, kind: output, shape index: {}]  }
   0x1   :  { %s16_s13 = sshll.u32 %s525_s12, 4  ;;  %s501_s16 = scalar_lea.hbm %s600_s1, 6144  ;;  %s17_s13 = int_to_ptr.vmem [resolvable:$true] %s16_s13 }
   0x2   :  { %p502_p0 = scmp.ne.s32.totalorder %s600_s1, %s501_s16  ;;  %p505_p1 = scmp.lt.u32.totalorder %s501_s16, %s600_s1 }
   0x4   :  { %p507_p2 = pnand %p505_p1, %p502_p0 }
   0x6   :  { %510 = shalt.err (!%p507_p2)
}
   0x7   :  { %s511_s21 = scalar_lea.vmem %s17_s13, 6144  ;;  %p516_p4 = scmp.lt.s32.totalorder %s17_s13, %s17_s13 }
   0x8   :  { %p512_p3 = scmp.ne.s32.totalorder %s17_s13, %s511_s21  ;;  %p517_p5 = scmp.lt.s32.totalorder %s511_s21, %s511_s21 }
   0xa   :  { %p518_p6 = por %p517_p5, %p516_p4 }
   0xc   :  { %p519_p7 = pnand %p518_p6, %p512_p3 }
   0xe   :  { %522 = shalt.err (!%p519_p7)
}
   0xf   :  { %s526_s22 = smov 128   ;;  %s527_s23 = smov 8  }
  0x10   :  { %22 = dma.hbm_to_vmem [thread:$0]  %s600_s1, 6144, %s17_s13, [#allocation3], %s526_s22, %s526_s22, %s527_s23  }
  0x11   :  { %523 = dma.done.wait [#allocation3], 6144  }
  0x12   :  { %524 = vsyncadd [#allocation3], 4294961152  ;;  %v528_v0 = vmov 0.0|0.0   ;;  %vm529_vm0 = vmmov 0   ;;  %v530_v1 = vmov 0.0   ;;  %v29_v2 = vld [vmem:[#allocation2] sm:$0xff] }
  0x13   :  { %439 = vmatprep.subr.bf16.mxu0 %v528_v0  ;;  %366 = vmatprep.mubr.msk.f32.mxu0 %vm529_vm0, %v530_v1  ;;  %v30_v3 = vld [vmem:[#allocation2 + $0x8] sm:$0xff]  ;;  %v31_v4 = vld [vmem:[#allocation2 + $0x10] sm:$0xff]  ;;  %v32_v6 = vld [vmem:[#allocation2 + $0x18] sm:$0xff]  ;;  %vm40_vm1 = vcmask 261120  }
  0x14   :  { %445 = vmatprep.subr.bf16.mxu1 %v528_v0  ;;  %401 = vmatprep.mubr.msk.f32.mxu1 %vm529_vm0, %v530_v1  ;;  %v440_v5 = vpack.c.bf16 %v30_v3, %v29_v2  ;;  %v116_v7 = vld [vmem:[#allocation2 + $0x80] sm:$0xff]  ;;  %v117_v8 = vld [vmem:[#allocation2 + $0x88] sm:$0xff]  ;;  %v118_v9 = vld [vmem:[#allocation2 + $0x90] sm:$0xff]  ;;  %v443_v11 = vpack.c.bf16 %v32_v6, %v31_v4 }
  0x15   :  { %v119_v10 = vld [vmem:[#allocation2 + $0x98] sm:$0xff]  ;;  %v446_v12 = vpack.c.bf16 %v117_v8, %v116_v7  ;;  %v120_v14 = vld [vmem:[#allocation2 + $0xa0] sm:$0xff]  ;;  %v121_v15 = vld [vmem:[#allocation2 + $0xa8] sm:$0xff] }
  0x16   :  { %441 = vmatpush3.bf16.msra.mxu0 %v440_v5  ;;  %v449_v13 = vpack.c.bf16 %v119_v10, %v118_v9  ;;  %v28_v16 = vld [vmem:[%s599_s0] sm:$0xff]  ;;  %v452_v17 = vpack.c.bf16 %v121_v15, %v120_v14  ;;  %v122_v18 = vld [vmem:[#allocation2 + $0xb0] sm:$0xff]  ;;  %v123_v19 = vld [vmem:[#allocation2 + $0xb8] sm:$0xff] }
  0x17   :  { %442 = vmatprep.subr.bf16.mxu0 %v528_v0  ;;  %447 = vmatpush3.bf16.msra.mxu1 %v446_v12  ;;  %v455_v20 = vpack.c.bf16 %v123_v19, %v122_v18  ;;  %v124_v21 = vld [vmem:[#allocation2 + $0xc0] sm:$0xff]  ;;  %v125_v22 = vld [vmem:[#allocation2 + $0xc8] sm:$0xff]  ;;  %v126_v24 = vld [vmem:[#allocation2 + $0xd0] sm:$0xff] }
  0x18   :  { %448 = vmatprep.subr.bf16.mxu1 %v528_v0  ;;  %v458_v23 = vpack.c.bf16 %v125_v22, %v124_v21  ;;  %v127_v25 = vld [vmem:[#allocation2 + $0xd8] sm:$0xff]  ;;  %v128_v27 = vld [vmem:[#allocation2 + $0xe0] sm:$0xff]  ;;  %v129_v28 = vld [vmem:[#allocation2 + $0xe8] sm:$0xff] }
  0x19   :  { %v461_v26 = vpack.c.bf16 %v127_v25, %v126_v24  ;;  %v464_v29 = vpack.c.bf16 %v129_v28, %v128_v27  ;;  %v130_v30 = vld [vmem:[#allocation2 + $0xf0] sm:$0xff]  ;;  %v131_v31 = vld [vmem:[#allocation2 + $0xf8] sm:$0xff]  ;;  %v212_v33 = vld [vmem:[#allocation2 + $0x100] sm:$0xff] }
  0x1a   :  { %444 = vmatpush3.bf16.msra.mxu0 %v443_v11  ;;  %v467_v32 = vpack.c.bf16 %v131_v31, %v130_v30  ;;  %v213_v34 = vld [vmem:[#allocation2 + $0x108] sm:$0xff]  ;;  %v214_v35 = vld [vmem:[#allocation2 + $0x110] sm:$0xff]  ;;  %v215_v37 = vld [vmem:[#allocation2 + $0x118] sm:$0xff] }
  0x1b   :  { %469 = vmatprep.subr.bf16.mxu0 %v528_v0  ;;  %450 = vmatpush3.bf16.msra.mxu1 %v449_v13  ;;  %v470_v36 = vpack.c.bf16 %v213_v34, %v212_v33  ;;  %v473_v38 = vpack.c.bf16 %v215_v37, %v214_v35  ;;  %v216_v39 = vld [vmem:[#allocation2 + $0x120] sm:$0xff]  ;;  %v217_v40 = vld [vmem:[#allocation2 + $0x128] sm:$0xff]  ;;  %v218_v42 = vld [vmem:[#allocation2 + $0x130] sm:$0xff] }
  0x1c   :  { %451 = vmatprep.subr.bf16.mxu1 %v528_v0  ;;  %v476_v41 = vpack.c.bf16 %v217_v40, %v216_v39  ;;  %v219_v43 = vld [vmem:[#allocation2 + $0x138] sm:$0xff]  ;;  %v220_v45 = vld [vmem:[#allocation2 + $0x140] sm:$0xff]  ;;  %v221_v46 = vld [vmem:[#allocation2 + $0x148] sm:$0xff] }
  0x1d   :  { %367 = vmatmul.mubr.msk.f32.vlgmr.msra.gmra.mrb[0].mxu0 %vm40_vm1, %v28_v16  ;;  %v479_v44 = vpack.c.bf16 %v219_v43, %v218_v42  ;;  %v482_v47 = vpack.c.bf16 %v221_v46, %v220_v45  ;;  %v222_v48 = vld [vmem:[#allocation2 + $0x150] sm:$0xff]  ;;  %v223_v49 = vld [vmem:[#allocation2 + $0x158] sm:$0xff]  ;;  %v224_v51 = vld [vmem:[#allocation2 + $0x160] sm:$0xff] }
  0x1e   :  { %436 = vmatprep.mubr.msk.f32.mxu0 %vm529_vm0, %v530_v1  ;;  %471 = vmatpush3.bf16.msra.mxu0 %v470_v36  ;;  %v485_v50 = vpack.c.bf16 %v223_v49, %v222_v48  ;;  %v225_v52 = vld [vmem:[#allocation2 + $0x168] sm:$0xff]  ;;  %v313_v54 = vld [vmem:[%s601_s2] ss:$0 sm:$0xff]  ;;  %v226_v59 = vld [vmem:[#allocation2 + $0x170] sm:$0xff] }
  0x1f   :  { %453 = vmatpush3.bf16.msra.mxu1 %v452_v17  ;;  %472 = vmatprep.subr.bf16.mxu0 %v528_v0  ;;  %v488_v53 = vpack.c.bf16 %v225_v52, %v224_v51  ;;  %v227_v60 = vld [vmem:[#allocation2 + $0x178] sm:$0xff]  ;;  %v316_v62 = vld [vmem:[%s601_s2 + $0x1] ss:$0 sm:$0xff]  ;;  %v318_v3 = vld [vmem:[%s601_s2 + $0x2] ss:$0 sm:$0xff] }
  0x20   :  { %454 = vmatprep.subr.bf16.mxu1 %v528_v0  ;;  %v491_v61 = vpack.c.bf16 %v227_v60, %v226_v59 }
  0x22   :  { %474 = vmatpush3.bf16.msra.mxu0 %v473_v38 }
  0x23   :  { %456 = vmatpush3.bf16.msra.mxu1 %v455_v20  ;;  %475 = vmatprep.subr.bf16.mxu0 %v528_v0 }
  0x24   :  { %457 = vmatprep.subr.bf16.mxu1 %v528_v0 }
  0x26   :  { %477 = vmatpush3.bf16.msra.mxu0 %v476_v41 }
  0x27   :  { %459 = vmatpush3.bf16.msra.mxu1 %v458_v23  ;;  %478 = vmatprep.subr.bf16.mxu0 %v528_v0 }
  0x28   :  { %460 = vmatprep.subr.bf16.mxu1 %v528_v0 }
  0x2a   :  { %480 = vmatpush3.bf16.msra.mxu0 %v479_v44 }
  0x2b   :  { %462 = vmatpush3.bf16.msra.mxu1 %v461_v26  ;;  %481 = vmatprep.subr.bf16.mxu0 %v528_v0 }
  0x2c   :  { %463 = vmatprep.subr.bf16.mxu1 %v528_v0 }
  0x2e   :  { %483 = vmatpush3.bf16.msra.mxu0 %v482_v47 }
  0x2f   :  { %465 = vmatpush3.bf16.msra.mxu1 %v464_v29  ;;  %484 = vmatprep.subr.bf16.mxu0 %v528_v0 }
  0x30   :  { %466 = vmatprep.subr.bf16.mxu1 %v528_v0 }
  0x32   :  { %486 = vmatpush3.bf16.msra.mxu0 %v485_v50 }
  0x33   :  { %468 = vmatpush3.bf16.msra.mxu1 %v467_v32  ;;  %487 = vmatprep.subr.bf16.mxu0 %v528_v0 }
  0x36   :  { %489 = vmatpush3.bf16.msra.mxu0 %v488_v53 }
  0x37   :  { %490 = vmatprep.subr.bf16.mxu0 %v528_v0 }
  0x3a   :  { %492 = vmatpush3.bf16.msra.mxu0 %v491_v61 }
  0xf0   :  { %v110_v55 = vpop.f32.mrb[0].mxu0 }
  0xf1   :  { %v111_v56 = vadd.f32 %v313_v54, %v110_v55  ;;  %v368_v57 = vpop.f32.mrb[1].mxu0 }
  0xf3   :  { %v114_v58 = vmax.f32 %v111_v56, 0.0 }
  0xf5   :  { %402 = vmatmul.mubr.f32.vlgmr.msra.gmra.mrb[0].mxu1 %v114_v58 }
 0x1c8   :  { %v206_v63 = vpop.f32.mrb[0].mxu1 }
 0x1c9   :  { %v207_v1 = vadd.f32 %v316_v62, %v206_v63  ;;  %v403_v0 = vpop.f32.mrb[1].mxu1 }
 0x1cb   :  { %v210_v2 = vmax.f32 %v207_v1, 0.0 }
 0x1cd   :  { %437 = vmatmul.mubr.f32.vlgmr.msra.gmra.mrb[2].mxu0 %v210_v2 }
 0x2a0   :  { %v302_v4 = vpop.f32.mrb[2].mxu0 }
 0x2a1   :  { %v303_v5 = vadd.f32 %v318_v3, %v302_v4  ;;  %v438_v6 = vpop.f32.mrb[3].mxu0 }
 0x2a3   :  { %499 = vtanh.f32 %v303_v5 }
 0x2ad   :  { %v500_v7 = vpop.eup %499 }
 0x2ae   :  { %307 = vst [vmem:[%s602_s3] sm:$0xff] %v500_v7 }
 0x2af   :  { %312 = vsyncpa [#allocation3], 1 }

</bundles_post_ra>
